<compile_context>
chip_gen: v7x
topology: tpu7x:2x2x1
jax: 0.10.0
libtpu: 0.0.40
codegen_flags: <defaults>
</compile_context>

<pallas_src>
import functools

import jax
import jax.numpy as jnp
from jax import lax
from jax.experimental import pallas as pl
from jax.experimental.pallas import tpu as pltpu

EPS = 1e-6
# Safe on v5e/v6e/v7x at these shapes.  For production C, raise toward 64-96 MiB on
# v5e/v6e (128 MiB physical VMEM) and keep the resident-weight + activation budget
# under ~48 MiB on v7x (64 MiB physical).
_VMEM_LIMIT = 32 * 1024 * 1024


# --------------------------------------------------------------------------
# small helpers
# --------------------------------------------------------------------------
def _layernorm(x):
    mean = jnp.mean(x, axis=-1, keepdims=True)
    xc = x - mean
    var = jnp.mean(xc * xc, axis=-1, keepdims=True)
    return xc * lax.rsqrt(var + EPS)


def _const_spec(shape):
    """Full-array block whose index never changes (weights stay resident in VMEM)."""
    nd = len(shape)
    return pl.BlockSpec(shape, lambda b, _nd=nd: (0,) * _nd)


def _params():
    return pltpu.CompilerParams(
        dimension_semantics=("parallel",),
        vmem_limit_bytes=_VMEM_LIMIT,
    )


# --------------------------------------------------------------------------
# Pallas kernels (one grid step == one batch)
# --------------------------------------------------------------------------
def _msa_kernel(x_ref, m_ref, wqkv_ref, bqkv_ref, wo_ref, bo_ref, o_ref, attn_ref,
                *, num_heads, head_dim, scale, channels):
    # LN(no affine) + adaLN modulation + fused QKV + self-attention + out-proj
    # + gate + residual, entirely in VMEM for this batch.
    x = x_ref[...]                              # (S, C) f32
    xn = _layernorm(x)
    shift = m_ref[0:1, :]                       # shift_msa
    scale1p = m_ref[1:2, :]                     # 1 + scale_msa (pre-incremented)
    gate = m_ref[2:3, :]                        # gate_msa
    h = (xn * scale1p + shift).astype(jnp.bfloat16)
    qkv = jnp.dot(h, wqkv_ref[...], preferred_element_type=jnp.float32) + bqkv_ref[...]

    # TODO(synk): for long S, tile the KV axis with an online-softmax (flash)
    #             accumulator instead of materializing the full (S, S) logits.
    for hh in range(num_heads):
        lo = hh * head_dim
        hi = lo + head_dim
        qh = qkv[:, lo:hi].astype(jnp.bfloat16)
        kh = qkv[:, channels + lo:channels + hi].astype(jnp.bfloat16)
        vh = qkv[:, 2 * channels + lo:2 * channels + hi].astype(jnp.bfloat16)
        s = lax.dot_general(qh, kh, (((1,), (1,)), ((), ())),
                            preferred_element_type=jnp.float32) * scale
        mmax = jnp.max(s, axis=-1, keepdims=True)
        p = jnp.exp(s - mmax)
        p = p / jnp.sum(p, axis=-1, keepdims=True)      # exact softmax divide
        attn_ref[:, lo:hi] = jnp.dot(p.astype(jnp.bfloat16), vh,
                                     preferred_element_type=jnp.float32)

    a = attn_ref[...].astype(jnp.bfloat16)
    proj = jnp.dot(a, wo_ref[...], preferred_element_type=jnp.float32) + bo_ref[...]
    o_ref[...] = x + proj * gate


def _mca_kernel(x_ref, ctx_ref, g_ref, b_ref, wq_ref, bq_ref, wkv_ref, bkv_ref,
                wo_ref, bo_ref, o_ref, attn_ref,
                *, num_heads, head_dim, scale, channels):
    # LN(affine) + cross-Q proj + context KV proj + cross-attention + out-proj
    # + residual, entirely in VMEM for this batch.
    x = x_ref[...]                              # (S, C) f32
    xn = _layernorm(x)
    h = (xn * g_ref[...] + b_ref[...]).astype(jnp.bfloat16)
    q = jnp.dot(h, wq_ref[...], preferred_element_type=jnp.float32) + bq_ref[...]

    ctx = ctx_ref[...].astype(jnp.bfloat16)     # (L, Cctx)
    kv = jnp.dot(ctx, wkv_ref[...], preferred_element_type=jnp.float32) + bkv_ref[...]

    for hh in range(num_heads):
        lo = hh * head_dim
        hi = lo + head_dim
        qh = q[:, lo:hi].astype(jnp.bfloat16)
        kh = kv[:, lo:hi].astype(jnp.bfloat16)
        vh = kv[:, channels + lo:channels + hi].astype(jnp.bfloat16)
        s = lax.dot_general(qh, kh, (((1,), (1,)), ((), ())),
                            preferred_element_type=jnp.float32) * scale
        mmax = jnp.max(s, axis=-1, keepdims=True)
        p = jnp.exp(s - mmax)
        p = p / jnp.sum(p, axis=-1, keepdims=True)      # exact softmax divide
        attn_ref[:, lo:hi] = jnp.dot(p.astype(jnp.bfloat16), vh,
                                     preferred_element_type=jnp.float32)

    a = attn_ref[...].astype(jnp.bfloat16)
    proj = jnp.dot(a, wo_ref[...], preferred_element_type=jnp.float32) + bo_ref[...]
    o_ref[...] = x + proj


def _ffn_kernel(x_ref, m_ref, w1_ref, b1_ref, w2_ref, b2_ref, o_ref):
    # LN(no affine) + modulation + (Linear -> tanh-GELU -> Linear) + gate + residual.
    # TODO(synk): for production C, split W1/W2 into k-tiled matmuls so the resident
    #             weight + hidden budget stays under ~48 MiB scoped VMEM on v7x.
    x = x_ref[...]
    xn = _layernorm(x)
    shift = m_ref[3:4, :]                       # shift_mlp
    scale1p = m_ref[4:5, :]                     # 1 + scale_mlp (pre-incremented)
    gate = m_ref[5:6, :]                        # gate_mlp
    h = (xn * scale1p + shift).astype(jnp.bfloat16)
    t = jnp.dot(h, w1_ref[...], preferred_element_type=jnp.float32) + b1_ref[...]
    t = jax.nn.gelu(t, approximate=True).astype(jnp.bfloat16)   # torch GELU(tanh)
    y = jnp.dot(t, w2_ref[...], preferred_element_type=jnp.float32) + b2_ref[...]
    o_ref[...] = x + y * gate


# --------------------------------------------------------------------------
# kernel wrappers
# --------------------------------------------------------------------------
def msa_fused(x, mod6, wqkv, bqkv, wo, bo, *, num_heads, s):
    n, c = x.shape
    b = n // s
    d = c // num_heads
    kern = functools.partial(_msa_kernel, num_heads=num_heads, head_dim=d,
                             scale=1.0 / (d ** 0.5), channels=c)
    xspec = pl.BlockSpec((s, c), lambda i: (i, 0))
    return pl.pallas_call(
        kern,
        out_shape=jax.ShapeDtypeStruct((n, c), jnp.float32),
        grid=(b,),
        in_specs=[xspec,
                  pl.BlockSpec((pl.Squeezed(), 6, c), lambda i: (i, 0, 0)),
                  _const_spec(wqkv.shape), _const_spec(bqkv.shape),
                  _const_spec(wo.shape), _const_spec(bo.shape)],
        out_specs=xspec,
        scratch_shapes=[pltpu.VMEM((s, c), jnp.float32)],
        compiler_params=_params(),
    )(x, mod6, wqkv, bqkv, wo, bo)


def mca_fused(x, context, g, beta, wq, bq, wkv, bkv, wo, bo, *, num_heads, s):
    n, c = x.shape
    b, l, cctx = context.shape
    d = c // num_heads
    kern = functools.partial(_mca_kernel, num_heads=num_heads, head_dim=d,
                             scale=1.0 / (d ** 0.5), channels=c)
    xspec = pl.BlockSpec((s, c), lambda i: (i, 0))
    return pl.pallas_call(
        kern,
        out_shape=jax.ShapeDtypeStruct((n, c), jnp.float32),
        grid=(b,),
        in_specs=[xspec,
                  pl.BlockSpec((pl.Squeezed(), l, cctx), lambda i: (i, 0, 0)),
                  _const_spec(g.shape), _const_spec(beta.shape),
                  _const_spec(wq.shape), _const_spec(bq.shape),
                  _const_spec(wkv.shape), _const_spec(bkv.shape),
                  _const_spec(wo.shape), _const_spec(bo.shape)],
        out_specs=xspec,
        scratch_shapes=[pltpu.VMEM((s, c), jnp.float32)],
        compiler_params=_params(),
    )(x, context, g, beta, wq, bq, wkv, bkv, wo, bo)


def ffn_fused(x, mod6, w1, b1, w2, b2, *, s):
    n, c = x.shape
    b = n // s
    xspec = pl.BlockSpec((s, c), lambda i: (i, 0))
    return pl.pallas_call(
        _ffn_kernel,
        out_shape=jax.ShapeDtypeStruct((n, c), jnp.float32),
        grid=(b,),
        in_specs=[xspec,
                  pl.BlockSpec((pl.Squeezed(), 6, c), lambda i: (i, 0, 0)),
                  _const_spec(w1.shape), _const_spec(b1.shape),
                  _const_spec(w2.shape), _const_spec(b2.shape)],
        out_specs=xspec,
        compiler_params=_params(),
    )(x, mod6, w1, b1, w2, b2)


# --------------------------------------------------------------------------
# full block forward
# --------------------------------------------------------------------------
def modulated_cross_block_forward(prep, x, jidx, mod, context, num_heads):
    # Layout assumption: tokens sorted & contiguous per batch (S = N // B rows each);
    # jidx is validated against this at the call site.
    del jidx
    n, c = x.shape
    b = mod.shape[0]
    s = n // b

    # adaLN_modulation: SiLU + Linear(C -> 6C) in plain JAX (tiny).  Rows:
    # [shift_msa, scale_msa, gate_msa, shift_mlp, scale_mlp, gate_mlp];
    # scale rows pre-incremented with 1.0 so the kernels skip the add.
    m = mod * jax.nn.sigmoid(mod)
    mod6 = (m @ prep["adaLN_w"] + prep["adaLN_b"]).reshape(b, 6, c)
    mod6 = mod6.at[:, 1, :].add(1.0).at[:, 4, :].add(1.0)

    # ---------------- MSA (one fused kernel, grid=(B,)) ----------------
    x = msa_fused(x, mod6, prep["qkv_w"], prep["qkv_b"],
                  prep["self_out_w"], prep["self_out_b"],
                  num_heads=num_heads, s=s)

    # ---------------- MCA (one fused kernel, grid=(B,)) ----------------
    x = mca_fused(x, context, prep["norm2_g"], prep["norm2_b"],
                  prep["q_w"], prep["q_b"], prep["kv_w"], prep["kv_b"],
                  prep["cross_out_w"], prep["cross_out_b"],
                  num_heads=num_heads, s=s)

    # ---------------- FFN (one fused kernel, grid=(B,)) ----------------
    x = ffn_fused(x, mod6, prep["mlp_w1"], prep["mlp_b1"],
                  prep["mlp_w2"], prep["mlp_b2"], s=s)
    return x


# --------------------------------------------------------------------------
# parameter init (synthetic) + one-time parameter prep
# --------------------------------------------------------------------------
def init_params(key, channels, ctx_channels, mlp_ratio=4.0):
    C, Cctx = channels, ctx_channels
    hidden = int(C * mlp_ratio)
    ks = jax.random.split(key, 8)
    w = lambda k, shp: 0.02 * jax.random.normal(k, shp, jnp.float32)
    z = lambda shp: jnp.zeros(shp, jnp.float32)
    return dict(
        adaLN_w=w(ks[0], (C, 6 * C)), adaLN_b=z((6 * C,)),
        qkv_w=w(ks[1], (C, 3 * C)), qkv_b=z((3 * C,)),
        self_out_w=w(ks[2], (C, C)), self_out_b=z((C,)),
        norm2_g=jnp.ones((C,), jnp.float32), norm2_b=z((C,)),
        q_w=w(ks[3], (C, C)), q_b=z((C,)),
        kv_w=w(ks[4], (Cctx, 2 * C)), kv_b=z((2 * C,)),
        cross_out_w=w(ks[5], (C, C)), cross_out_b=z((C,)),
        mlp_w1=w(ks[6], (C, hidden)), mlp_b1=z((hidden,)),
        mlp_w2=w(ks[7], (hidden, C)), mlp_b2=z((C,)),
    )


def prepare_params(params):
    """One-time prep: bf16 MXU weights (f32 master copies untouched), lane-dense
    (1, X) bias rows.  Do this once at setup, not per forward call."""
    bf = lambda w: w.astype(jnp.bfloat16)
    row = lambda v: v.reshape(1, -1)
    return dict(
        adaLN_w=params["adaLN_w"], adaLN_b=params["adaLN_b"],
        qkv_w=bf(params["qkv_w"]), qkv_b=row(params["qkv_b"]),
        self_out_w=bf(params["self_out_w"]), self_out_b=row(params["self_out_b"]),
        norm2_g=row(params["norm2_g"]), norm2_b=row(params["norm2_b"]),
        q_w=bf(params["q_w"]), q_b=row(params["q_b"]),
        kv_w=bf(params["kv_w"]), kv_b=row(params["kv_b"]),
        cross_out_w=bf(params["cross_out_w"]), cross_out_b=row(params["cross_out_b"]),
        mlp_w1=bf(params["mlp_w1"]), mlp_b1=row(params["mlp_b1"]),
        mlp_w2=bf(params["mlp_w2"]), mlp_b2=row(params["mlp_b2"]),
    )


# --------------------------------------------------------------------------
# main
# --------------------------------------------------------------------------
if __name__ == "__main__":
    B = 2            # batch
    S = 16           # sparse tokens per batch  -> N = 32 total tokens
    C = 64           # channels
    Cctx = 48        # ctx_channels
    H = 4            # num_heads (head_dim = 16)
    L = 8            # context sequence length
    N = B * S

    key = jax.random.PRNGKey(0)
    kx, kmod, kctx, kparams = jax.random.split(key, 4)

    x = jax.random.normal(kx, (N, C), jnp.float32)          # VDBTensor.jdata
    jidx = jnp.repeat(jnp.arange(B, dtype=jnp.int32), S)    # VDBTensor.jidx
    mod = jax.random.normal(kmod, (B, C), jnp.float32)
    context = jax.random.normal(kctx, (B, L, Cctx), jnp.float32)

    params = init_params(kparams, C, Cctx, mlp_ratio=4.0)
    prep = prepare_params(params)

    # Layout assumption: tokens are sorted & contiguous per batch (S tokens each).
    assert bool(jnp.all(jidx == jnp.repeat(jnp.arange(B, dtype=jnp.int32), S)))

    out = modulated_cross_block_forward(prep, x, jidx, mod, context, num_heads=H)
    out = jax.block_until_ready(out)
    assert out.shape == (N, C) and out.dtype == jnp.float32
    assert bool(jnp.all(jnp.isfinite(out)))
    print("KERNEL_OK")
</pallas_src>

<mosaic_0001>
module attributes {stable_mosaic.version = 11 : i64} {
  func.func @_msa_kernel(%arg0: i32, %arg1: memref<16x64xf32, #tpu.memory_space<vmem>>, %arg2: memref<1x6x64xf32, #tpu.memory_space<vmem>>, %arg3: memref<64x192xbf16, #tpu.memory_space<vmem>>, %arg4: memref<1x192xf32, #tpu.memory_space<vmem>>, %arg5: memref<64x64xbf16, #tpu.memory_space<vmem>>, %arg6: memref<1x64xf32, #tpu.memory_space<vmem>>, %arg7: memref<16x64xf32, #tpu.memory_space<vmem>>, %arg8: memref<16x64xf32, #tpu.memory_space<vmem>>) attributes {dimension_semantics = [#tpu.dimension_semantics<parallel>], iteration_bounds = array<i64: 2>, scalar_prefetch = 0 : i64, scratch_operands = 1 : i64, tpu.core_type = #tpu.core_type<tc>, window_params = [{transform_indices = @transform_0, window_bounds = array<i64: 16, 64>}, {transform_indices = @transform_1, window_bounds = array<i64: 1, 6, 64>}, {pipeline_mode = #tpu.pipeline_mode<synchronous>, transform_indices = @transform_2, window_bounds = array<i64: 64, 192>}, {pipeline_mode = #tpu.pipeline_mode<synchronous>, transform_indices = @transform_3, window_bounds = array<i64: 1, 192>}, {pipeline_mode = #tpu.pipeline_mode<synchronous>, transform_indices = @transform_4, window_bounds = array<i64: 64, 64>}, {pipeline_mode = #tpu.pipeline_mode<synchronous>, transform_indices = @transform_5, window_bounds = array<i64: 1, 64>}, {transform_indices = @transform_6, window_bounds = array<i64: 16, 64>}]} {
    %c0 = arith.constant 0 : index
    %c0_0 = arith.constant 0 : index
    %0 = vector.load %arg1[%c0, %c0_0] : memref<16x64xf32, #tpu.memory_space<vmem>>, vector<16x64xf32>
    %cst = arith.constant dense<0.000000e+00> : vector<16xf32>
    %1 = vector.multi_reduction <add>, %0, %cst [1] : vector<16x64xf32> to vector<16xf32>
    %2 = vector.shape_cast %1 : vector<16xf32> to vector<16x1xf32>
    %cst_1 = arith.constant 6.400000e+01 : f32
    %3 = vector.broadcast %cst_1 : f32 to vector<16x1xf32>
    %4 = arith.divf %2, %3 : vector<16x1xf32>
    %5 = vector.broadcast %4 : vector<16x1xf32> to vector<16x64xf32>
    %6 = arith.subf %0, %5 : vector<16x64xf32>
    %7 = arith.mulf %6, %6 : vector<16x64xf32>
    %cst_2 = arith.constant dense<0.000000e+00> : vector<16xf32>
    %8 = vector.multi_reduction <add>, %7, %cst_2 [1] : vector<16x64xf32> to vector<16xf32>
    %9 = vector.shape_cast %8 : vector<16xf32> to vector<16x1xf32>
    %cst_3 = arith.constant 6.400000e+01 : f32
    %10 = vector.broadcast %cst_3 : f32 to vector<16x1xf32>
    %11 = arith.divf %9, %10 : vector<16x1xf32>
    %cst_4 = arith.constant 9.99999997E-7 : f32
    %12 = vector.broadcast %cst_4 : f32 to vector<16x1xf32>
    %13 = arith.addf %11, %12 : vector<16x1xf32>
    %14 = math.rsqrt %13 : vector<16x1xf32>
    %15 = vector.broadcast %14 : vector<16x1xf32> to vector<16x64xf32>
    %16 = arith.mulf %6, %15 : vector<16x64xf32>
    %c0_5 = arith.constant 0 : index
    %c0_6 = arith.constant 0 : index
    %c0_7 = arith.constant 0 : index
    %17 = vector.load %arg2[%c0_5, %c0_6, %c0_7] : memref<1x6x64xf32, #tpu.memory_space<vmem>>, vector<1x1x64xf32>
    %18 = vector.shape_cast %17 : vector<1x1x64xf32> to vector<1x64xf32>
    %c0_8 = arith.constant 0 : index
    %c1 = arith.constant 1 : index
    %c0_9 = arith.constant 0 : index
    %19 = vector.load %arg2[%c0_8, %c1, %c0_9] : memref<1x6x64xf32, #tpu.memory_space<vmem>>, vector<1x1x64xf32>
    %20 = vector.shape_cast %19 : vector<1x1x64xf32> to vector<1x64xf32>
    %c0_10 = arith.constant 0 : index
    %c2 = arith.constant 2 : index
    %c0_11 = arith.constant 0 : index
    %21 = vector.load %arg2[%c0_10, %c2, %c0_11] : memref<1x6x64xf32, #tpu.memory_space<vmem>>, vector<1x1x64xf32>
    %22 = vector.shape_cast %21 : vector<1x1x64xf32> to vector<1x64xf32>
    %23 = vector.broadcast %20 : vector<1x64xf32> to vector<16x64xf32>
    %24 = arith.mulf %16, %23 : vector<16x64xf32>
    %25 = vector.broadcast %18 : vector<1x64xf32> to vector<16x64xf32>
    %26 = arith.addf %24, %25 : vector<16x64xf32>
    %27 = arith.truncf %26 : vector<16x64xf32> to vector<16x64xbf16>
    %c0_12 = arith.constant 0 : index
    %c0_13 = arith.constant 0 : index
    %28 = vector.load %arg3[%c0_12, %c0_13] : memref<64x192xbf16, #tpu.memory_space<vmem>>, vector<64x192xbf16>
    %cst_14 = arith.constant dense<0.000000e+00> : vector<16x192xf32>
    %29 = tpu.matmul %27, %28, %cst_14 {dimension_numbers = #tpu.dot_dimension_numbers<[1], [0], [0], [1], [0, 0, 1, 1], [], []>} : vector<16x64xbf16>, vector<64x192xbf16>, vector<16x192xf32> -> vector<16x192xf32>
    %c0_15 = arith.constant 0 : index
    %c0_16 = arith.constant 0 : index
    %30 = vector.load %arg4[%c0_15, %c0_16] : memref<1x192xf32, #tpu.memory_space<vmem>>, vector<1x192xf32>
    %31 = vector.broadcast %30 : vector<1x192xf32> to vector<16x192xf32>
    %32 = arith.addf %29, %31 : vector<16x192xf32>
    %33 = vector.extract_strided_slice %32 {offsets = [0, 0], sizes = [16, 16], strides = [1, 1]} : vector<16x192xf32> to vector<16x16xf32>
    %34 = arith.truncf %33 : vector<16x16xf32> to vector<16x16xbf16>
    %35 = vector.extract_strided_slice %32 {offsets = [0, 64], sizes = [16, 16], strides = [1, 1]} : vector<16x192xf32> to vector<16x16xf32>
    %36 = arith.truncf %35 : vector<16x16xf32> to vector<16x16xbf16>
    %37 = vector.extract_strided_slice %32 {offsets = [0, 128], sizes = [16, 16], strides = [1, 1]} : vector<16x192xf32> to vector<16x16xf32>
    %38 = arith.truncf %37 : vector<16x16xf32> to vector<16x16xbf16>
    %cst_17 = arith.constant dense<0.000000e+00> : vector<16x16xf32>
    %39 = tpu.matmul %34, %36, %cst_17 {dimension_numbers = #tpu.dot_dimension_numbers<[1], [1], [0], [0], [0, 0, 1, 0], [], []>} : vector<16x16xbf16>, vector<16x16xbf16>, vector<16x16xf32> -> vector<16x16xf32>
    %cst_18 = arith.constant 2.500000e-01 : f32
    %40 = vector.broadcast %cst_18 : f32 to vector<16x16xf32>
    %41 = arith.mulf %39, %40 : vector<16x16xf32>
    %cst_19 = arith.constant dense<0xFF800000> : vector<16xf32>
    %42 = vector.multi_reduction <maximumf>, %41, %cst_19 [1] : vector<16x16xf32> to vector<16xf32>
    %43 = vector.shape_cast %42 : vector<16xf32> to vector<16x1xf32>
    %44 = vector.broadcast %43 : vector<16x1xf32> to vector<16x16xf32>
    %45 = arith.subf %41, %44 : vector<16x16xf32>
    %46 = math.exp %45 : vector<16x16xf32>
    %cst_20 = arith.constant dense<0.000000e+00> : vector<16xf32>
    %47 = vector.multi_reduction <add>, %46, %cst_20 [1] : vector<16x16xf32> to vector<16xf32>
    %48 = vector.shape_cast %47 : vector<16xf32> to vector<16x1xf32>
    %49 = vector.broadcast %48 : vector<16x1xf32> to vector<16x16xf32>
    %50 = arith.divf %46, %49 : vector<16x16xf32>
    %51 = arith.truncf %50 : vector<16x16xf32> to vector<16x16xbf16>
    %cst_21 = arith.constant dense<0.000000e+00> : vector<16x16xf32>
    %52 = tpu.matmul %51, %38, %cst_21 {dimension_numbers = #tpu.dot_dimension_numbers<[1], [0], [0], [1], [0, 0, 1, 1], [], []>} : vector<16x16xbf16>, vector<16x16xbf16>, vector<16x16xf32> -> vector<16x16xf32>
    %c0_22 = arith.constant 0 : index
    %c0_23 = arith.constant 0 : index
    %53 = vector.load %arg8[%c0_22, %c0_23] : memref<16x64xf32, #tpu.memory_space<vmem>>, vector<16x16xf32>
    tpu.vector_store %arg8[%c0_22, %c0_23], %52 {strides = array<i32>} : memref<16x64xf32, #tpu.memory_space<vmem>>, vector<16x16xf32>,
    %54 = vector.extract_strided_slice %32 {offsets = [0, 16], sizes = [16, 16], strides = [1, 1]} : vector<16x192xf32> to vector<16x16xf32>
    %55 = arith.truncf %54 : vector<16x16xf32> to vector<16x16xbf16>
    %56 = vector.extract_strided_slice %32 {offsets = [0, 80], sizes = [16, 16], strides = [1, 1]} : vector<16x192xf32> to vector<16x16xf32>
    %57 = arith.truncf %56 : vector<16x16xf32> to vector<16x16xbf16>
    %58 = vector.extract_strided_slice %32 {offsets = [0, 144], sizes = [16, 16], strides = [1, 1]} : vector<16x192xf32> to vector<16x16xf32>
    %59 = arith.truncf %58 : vector<16x16xf32> to vector<16x16xbf16>
    %cst_24 = arith.constant dense<0.000000e+00> : vector<16x16xf32>
    %60 = tpu.matmul %55, %57, %cst_24 {dimension_numbers = #tpu.dot_dimension_numbers<[1], [1], [0], [0], [0, 0, 1, 0], [], []>} : vector<16x16xbf16>, vector<16x16xbf16>, vector<16x16xf32> -> vector<16x16xf32>
    %cst_25 = arith.constant 2.500000e-01 : f32
    %61 = vector.broadcast %cst_25 : f32 to vector<16x16xf32>
    %62 = arith.mulf %60, %61 : vector<16x16xf32>
    %cst_26 = arith.constant dense<0xFF800000> : vector<16xf32>
    %63 = vector.multi_reduction <maximumf>, %62, %cst_26 [1] : vector<16x16xf32> to vector<16xf32>
    %64 = vector.shape_cast %63 : vector<16xf32> to vector<16x1xf32>
    %65 = vector.broadcast %64 : vector<16x1xf32> to vector<16x16xf32>
    %66 = arith.subf %62, %65 : vector<16x16xf32>
    %67 = math.exp %66 : vector<16x16xf32>
    %cst_27 = arith.constant dense<0.000000e+00> : vector<16xf32>
    %68 = vector.multi_reduction <add>, %67, %cst_27 [1] : vector<16x16xf32> to vector<16xf32>
    %69 = vector.shape_cast %68 : vector<16xf32> to vector<16x1xf32>
    %70 = vector.broadcast %69 : vector<16x1xf32> to vector<16x16xf32>
    %71 = arith.divf %67, %70 : vector<16x16xf32>
    %72 = arith.truncf %71 : vector<16x16xf32> to vector<16x16xbf16>
    %cst_28 = arith.constant dense<0.000000e+00> : vector<16x16xf32>
    %73 = tpu.matmul %72, %59, %cst_28 {dimension_numbers = #tpu.dot_dimension_numbers<[1], [0], [0], [1], [0, 0, 1, 1], [], []>} : vector<16x16xbf16>, vector<16x16xbf16>, vector<16x16xf32> -> vector<16x16xf32>
    %c0_29 = arith.constant 0 : index
    %c16 = arith.constant 16 : index
    %74 = vector.load %arg8[%c0_29, %c16] : memref<16x64xf32, #tpu.memory_space<vmem>>, vector<16x16xf32>
    tpu.vector_store %arg8[%c0_29, %c16], %73 {strides = array<i32>} : memref<16x64xf32, #tpu.memory_space<vmem>>, vector<16x16xf32>,
    %75 = vector.extract_strided_slice %32 {offsets = [0, 32], sizes = [16, 16], strides = [1, 1]} : vector<16x192xf32> to vector<16x16xf32>
    %76 = arith.truncf %75 : vector<16x16xf32> to vector<16x16xbf16>
    %77 = vector.extract_strided_slice %32 {offsets = [0, 96], sizes = [16, 16], strides = [1, 1]} : vector<16x192xf32> to vector<16x16xf32>
    %78 = arith.truncf %77 : vector<16x16xf32> to vector<16x16xbf16>
    %79 = vector.extract_strided_slice %32 {offsets = [0, 160], sizes = [16, 16], strides = [1, 1]} : vector<16x192xf32> to vector<16x16xf32>
    %80 = arith.truncf %79 : vector<16x16xf32> to vector<16x16xbf16>
    %cst_30 = arith.constant dense<0.000000e+00> : vector<16x16xf32>
    %81 = tpu.matmul %76, %78, %cst_30 {dimension_numbers = #tpu.dot_dimension_numbers<[1], [1], [0], [0], [0, 0, 1, 0], [], []>} : vector<16x16xbf16>, vector<16x16xbf16>, vector<16x16xf32> -> vector<16x16xf32>
    %cst_31 = arith.constant 2.500000e-01 : f32
    %82 = vector.broadcast %cst_31 : f32 to vector<16x16xf32>
    %83 = arith.mulf %81, %82 : vector<16x16xf32>
    %cst_32 = arith.constant dense<0xFF800000> : vector<16xf32>
    %84 = vector.multi_reduction <maximumf>, %83, %cst_32 [1] : vector<16x16xf32> to vector<16xf32>
    %85 = vector.shape_cast %84 : vector<16xf32> to vector<16x1xf32>
    %86 = vector.broadcast %85 : vector<16x1xf32> to vector<16x16xf32>
    %87 = arith.subf %83, %86 : vector<16x16xf32>
    %88 = math.exp %87 : vector<16x16xf32>
    %cst_33 = arith.constant dense<0.000000e+00> : vector<16xf32>
    %89 = vector.multi_reduction <add>, %88, %cst_33 [1] : vector<16x16xf32> to vector<16xf32>
    %90 = vector.shape_cast %89 : vector<16xf32> to vector<16x1xf32>
    %91 = vector.broadcast %90 : vector<16x1xf32> to vector<16x16xf32>
    %92 = arith.divf %88, %91 : vector<16x16xf32>
    %93 = arith.truncf %92 : vector<16x16xf32> to vector<16x16xbf16>
    %cst_34 = arith.constant dense<0.000000e+00> : vector<16x16xf32>
    %94 = tpu.matmul %93, %80, %cst_34 {dimension_numbers = #tpu.dot_dimension_numbers<[1], [0], [0], [1], [0, 0, 1, 1], [], []>} : vector<16x16xbf16>, vector<16x16xbf16>, vector<16x16xf32> -> vector<16x16xf32>
    %c0_35 = arith.constant 0 : index
    %c32 = arith.constant 32 : index
    %95 = vector.load %arg8[%c0_35, %c32] : memref<16x64xf32, #tpu.memory_space<vmem>>, vector<16x16xf32>
    tpu.vector_store %arg8[%c0_35, %c32], %94 {strides = array<i32>} : memref<16x64xf32, #tpu.memory_space<vmem>>, vector<16x16xf32>,
    %96 = vector.extract_strided_slice %32 {offsets = [0, 48], sizes = [16, 16], strides = [1, 1]} : vector<16x192xf32> to vector<16x16xf32>
    %97 = arith.truncf %96 : vector<16x16xf32> to vector<16x16xbf16>
    %98 = vector.extract_strided_slice %32 {offsets = [0, 112], sizes = [16, 16], strides = [1, 1]} : vector<16x192xf32> to vector<16x16xf32>
    %99 = arith.truncf %98 : vector<16x16xf32> to vector<16x16xbf16>
    %100 = vector.extract_strided_slice %32 {offsets = [0, 176], sizes = [16, 16], strides = [1, 1]} : vector<16x192xf32> to vector<16x16xf32>
    %101 = arith.truncf %100 : vector<16x16xf32> to vector<16x16xbf16>
    %cst_36 = arith.constant dense<0.000000e+00> : vector<16x16xf32>
    %102 = tpu.matmul %97, %99, %cst_36 {dimension_numbers = #tpu.dot_dimension_numbers<[1], [1], [0], [0], [0, 0, 1, 0], [], []>} : vector<16x16xbf16>, vector<16x16xbf16>, vector<16x16xf32> -> vector<16x16xf32>
    %cst_37 = arith.constant 2.500000e-01 : f32
    %103 = vector.broadcast %cst_37 : f32 to vector<16x16xf32>
    %104 = arith.mulf %102, %103 : vector<16x16xf32>
    %cst_38 = arith.constant dense<0xFF800000> : vector<16xf32>
    %105 = vector.multi_reduction <maximumf>, %104, %cst_38 [1] : vector<16x16xf32> to vector<16xf32>
    %106 = vector.shape_cast %105 : vector<16xf32> to vector<16x1xf32>
    %107 = vector.broadcast %106 : vector<16x1xf32> to vector<16x16xf32>
    %108 = arith.subf %104, %107 : vector<16x16xf32>
    %109 = math.exp %108 : vector<16x16xf32>
    %cst_39 = arith.constant dense<0.000000e+00> : vector<16xf32>
    %110 = vector.multi_reduction <add>, %109, %cst_39 [1] : vector<16x16xf32> to vector<16xf32>
    %111 = vector.shape_cast %110 : vector<16xf32> to vector<16x1xf32>
    %112 = vector.broadcast %111 : vector<16x1xf32> to vector<16x16xf32>
    %113 = arith.divf %109, %112 : vector<16x16xf32>
    %114 = arith.truncf %113 : vector<16x16xf32> to vector<16x16xbf16>
    %cst_40 = arith.constant dense<0.000000e+00> : vector<16x16xf32>
    %115 = tpu.matmul %114, %101, %cst_40 {dimension_numbers = #tpu.dot_dimension_numbers<[1], [0], [0], [1], [0, 0, 1, 1], [], []>} : vector<16x16xbf16>, vector<16x16xbf16>, vector<16x16xf32> -> vector<16x16xf32>
    %c0_41 = arith.constant 0 : index
    %c48 = arith.constant 48 : index
    %116 = vector.load %arg8[%c0_41, %c48] : memref<16x64xf32, #tpu.memory_space<vmem>>, vector<16x16xf32>
    tpu.vector_store %arg8[%c0_41, %c48], %115 {strides = array<i32>} : memref<16x64xf32, #tpu.memory_space<vmem>>, vector<16x16xf32>,
    %c0_42 = arith.constant 0 : index
    %c0_43 = arith.constant 0 : index
    %117 = vector.load %arg8[%c0_42, %c0_43] : memref<16x64xf32, #tpu.memory_space<vmem>>, vector<16x64xf32>
    %118 = arith.truncf %117 : vector<16x64xf32> to vector<16x64xbf16>
    %c0_44 = arith.constant 0 : index
    %c0_45 = arith.constant 0 : index
    %119 = vector.load %arg5[%c0_44, %c0_45] : memref<64x64xbf16, #tpu.memory_space<vmem>>, vector<64x64xbf16>
    %cst_46 = arith.constant dense<0.000000e+00> : vector<16x64xf32>
    %120 = tpu.matmul %118, %119, %cst_46 {dimension_numbers = #tpu.dot_dimension_numbers<[1], [0], [0], [1], [0, 0, 1, 1], [], []>} : vector<16x64xbf16>, vector<64x64xbf16>, vector<16x64xf32> -> vector<16x64xf32>
    %c0_47 = arith.constant 0 : index
    %c0_48 = arith.constant 0 : index
    %121 = vector.load %arg6[%c0_47, %c0_48] : memref<1x64xf32, #tpu.memory_space<vmem>>, vector<1x64xf32>
    %122 = vector.broadcast %121 : vector<1x64xf32> to vector<16x64xf32>
    %123 = arith.addf %120, %122 : vector<16x64xf32>
    %124 = vector.broadcast %22 : vector<1x64xf32> to vector<16x64xf32>
    %125 = arith.mulf %123, %124 : vector<16x64xf32>
    %126 = arith.addf %0, %125 : vector<16x64xf32>
    %c0_49 = arith.constant 0 : index
    %c0_50 = arith.constant 0 : index
    %127 = vector.load %arg7[%c0_49, %c0_50] : memref<16x64xf32, #tpu.memory_space<vmem>>, vector<16x64xf32>
    tpu.vector_store %arg7[%c0_49, %c0_50], %126 {strides = array<i32>} : memref<16x64xf32, #tpu.memory_space<vmem>>, vector<16x64xf32>,
    return
  }
  func.func @transform_0(%arg0: i32) -> (i32, i32) {
    %c0_i32 = arith.constant 0 : i32
    %c0_i32_0 = arith.constant 0 : i32
    return %arg0, %c0_i32 : i32, i32
  }
  func.func @transform_1(%arg0: i32) -> (i32, i32, i32) {
    %c0_i32 = arith.constant 0 : i32
    %c0_i32_0 = arith.constant 0 : i32
    %c0_i32_1 = arith.constant 0 : i32
    return %arg0, %c0_i32, %c0_i32_0 : i32, i32, i32
  }
  func.func @transform_2(%arg0: i32) -> (i32, i32) {
    %c0_i32 = arith.constant 0 : i32
    %c0_i32_0 = arith.constant 0 : i32
    %c0_i32_1 = arith.constant 0 : i32
    return %c0_i32, %c0_i32_0 : i32, i32
  }
  func.func @transform_3(%arg0: i32) -> (i32, i32) {
    %c0_i32 = arith.constant 0 : i32
    %c0_i32_0 = arith.constant 0 : i32
    %c0_i32_1 = arith.constant 0 : i32
    return %c0_i32, %c0_i32_0 : i32, i32
  }
  func.func @transform_4(%arg0: i32) -> (i32, i32) {
    %c0_i32 = arith.constant 0 : i32
    %c0_i32_0 = arith.constant 0 : i32
    %c0_i32_1 = arith.constant 0 : i32
    return %c0_i32, %c0_i32_0 : i32, i32
  }
  func.func @transform_5(%arg0: i32) -> (i32, i32) {
    %c0_i32 = arith.constant 0 : i32
    %c0_i32_0 = arith.constant 0 : i32
    %c0_i32_1 = arith.constant 0 : i32
    return %c0_i32, %c0_i32_0 : i32, i32
  }
  func.func @transform_6(%arg0: i32) -> (i32, i32) {
    %c0_i32 = arith.constant 0 : i32
    %c0_i32_0 = arith.constant 0 : i32
    return %arg0, %c0_i32 : i32, i32
  }
}

</mosaic_0001>

<bundles_post_ra>
// kernel: tpu_custom_call.1
= control target key start
LH: loop header
LB: loop body
LE: loop exit
PB: predicated region body
PF: predicated region fallthrough
CT: control target
= control target key end

     0   :  { %11 = vsyncpa [#allocation4], 0  ;;  %s1967_s0 = inlined_call_operand.hbm [shape: f32[32,64], index: 0, kind: input, shape index: {}]   ;;  %s1968_s1 = inlined_call_operand.vmem [shape: f32[2,6,64], index: 1, kind: input, shape index: {}]   ;;  %s1969_s2 = inlined_call_operand.hbm [shape: bf16[64,192], index: 2, kind: input, shape index: {}]   ;;  %s1970_s3 = inlined_call_operand.vmem [shape: f32[1,192], index: 3, kind: input, shape index: {}]   ;;  %s1971_s4 = inlined_call_operand.vmem [shape: bf16[64,64], index: 4, kind: input, shape index: {}]   ;;  %s1972_s5 = inlined_call_operand.vmem [shape: f32[1,64], index: 5, kind: input, shape index: {}]   ;;  %s1973_s6 = inlined_call_operand.hbm [shape: f32[32,64], index: 6, kind: output, shape index: {}]  }
   0x1   :  { %13 = vsyncpa [#allocation4 + $0x1], 0 }
   0x2   :  { %14 = vsyncpa [#allocation7], 0 }
   0x3   :  { %15 = vsyncpa [#allocation5], 0 }
   0x4   :  { %17 = vsyncpa [#allocation5 + $0x1], 0  ;;  %s1620_s21 = smov 0   ;;  %s1622_s22 = smov 0  }
   0x5   :  { %s1624_s23 = smov 0   ;;  %s1626_s24 = smov 0  }
   0x6 LB: > { %s1641_s25 = sadd.s32 4294967295, %s1566_s24   ;;  %s1189_s26 = sadd.s32 4294967294, %s1566_s24   ;;  %s1566_s24 = sphi %s1626_s24, %s1993_s24   ;;  %s1562_s23 = sphi %s1624_s23, %s1992_s23   ;;  %s1558_s22 = sphi %s1622_s22, %s1991_s22   ;;  %s1554_s21 = sphi %s1620_s21, %s1990_s21  }
   0x7   : > { %p43_p0 = scmp.ne.s32.totalorder %s1558_s22, %s1554_s21  ;;  %p1974_p1 = scmp.eq.s32.totalorder %s1641_s25, 0 }
   0x8   : > { %p183_p3 = scmp.eq.s32.totalorder %s1189_s26, 1  ;;  %p1190_p5 = scmp.ge.s32.totalorder %s1566_s24, 1 }
   0x9   : > { %p1650_p4 = por %p1974_p1, %p43_p0  ;;  %p190_p7 = scmp.lt.s32.totalorder %s1566_s24, 3 }
   0xa   : > { %p1655_p6 = por %p183_p3, %p43_p0  ;;  %s1568_s30 = smov [#allocation6]  }
   0xb   : > { %s1977_s27 = scalar_select %p1650_p4, 1, 0 }
   0xc   : > { %s1978_s28 = scalar_select %p1655_p6, 1, 0 }
   0xd   : > { %p1660_p8 = pnand %p1190_p5, %p190_p7  ;;  %s202_s7 = sshll.u32 %s1568_s30, 4  ;;  %s1664_s7 = int_to_ptr.vmem [resolvable:$true] %s202_s7 }
   0xe   : > { %s1676_s9 = sadd.s32 1, %s1566_s24   ;;  %s30_s10 = sadd.s32 1, %s1562_s23 }
   0xf   : > { %s1979_s29 = scalar_select %p1660_p8, 1, 0 }
  0x10   : > { %p1323_p9 = pneg %p1660_p8  ;;  %s27_s11 = ssub.s32 %s1566_s24, %s1676_s9 }
  0x11   : > { %s1438_s14 = scalar_lea.hbm %s1969_s2, 1024 }
  0x12   : > { %p1671_p11 = pnand %p1323_p9, %p1974_p1  ;;  %p1439_p12 = scmp.ne.s32.totalorder %s1969_s2, %s1438_s14 }
  0x13   : > { %p1445_p5 = scmp.lt.u32.totalorder %s1438_s14, %s1969_s2 }
  0x14   : > { %p1440_p13 = pneg %p1671_p11 }
  0x16   : > { %p1441_p0 = pnand %p1440_p13, %p1439_p12 }
  0x18   : > { %p1442_p3 = pneg %p1441_p0 }
  0x1a   : > { %p1447_p7 = pnand %p1445_p5, %p1442_p3 }
  0x1c   : > { %1450 = shalt.err (!%p1447_p7)
}
  0x1d   : > { %s1451_s19 = scalar_lea.vmem %s1664_s7, 1024  ;;  %p1459_p2 = scmp.lt.s32.totalorder %s1664_s7, %s1664_s7 }
  0x1e   : > { %p1452_p9 = scmp.ne.s32.totalorder %s1664_s7, %s1451_s19  ;;  %p1460_p6 = scmp.lt.s32.totalorder %s1451_s19, %s1451_s19 }
  0x20   : > { %p1454_p10 = pnand %p1452_p9, %p1440_p13  ;;  %p1461_p4 = por %p1460_p6, %p1459_p2 }
  0x22   : > { %p1455_p1 = pneg %p1454_p10 }
  0x24   : > { %p1462_p8 = pnand %p1461_p4, %p1455_p1 }
  0x26   : > { %1465 = shalt.err (!%p1462_p8)
}
  0x27   : > { %s1569_s20 = smov 128   ;;  %s1570_s26 = smov 8  }
  0x28   : > { %1326 = dma.hbm_to_vmem [thread:$0]  (!%p1671_p11), %s1969_s2, 1024, %s1664_s7, [#allocation7], %s1569_s20, %s1569_s20, %s1570_s26  }
  0x29   : > { %p28_p1 = scmp.eq.s32.totalorder %s27_s11, 0  ;;  %p37_p2 = scmp.ne.s32.totalorder %s1562_s23, %s1558_s22 }
  0x2a   : > { %p38_p4 = scmp.eq.s32.totalorder %s1566_s24, 0  ;;  %p1336_p6 = scmp.lt.s32.totalorder %s1566_s24, 2 }
  0x2b   : > { %s1710_s13 = scalar_select %p28_p1, %s1562_s23, %s30_s10  }
  0x2c   : > { %p39_p8 = por %p38_p4, %p37_p2  ;;  %p1981_p10 = scmp.eq.s32.totalorder %s1641_s25, 1 }
  0x2d   : > { %s225_s8 = sand.u32 1, %s1562_s23   ;;  %s1232_s15 = sshll.u32 %s1566_s24, 8 }
  0x2e   : > { %p1714_p12 = por %p1981_p10, %p37_p2  ;;  %s1193_s16 = sshll.u32 %s225_s8, 4 }
  0x2f   : > { %s1723_s19 = scalar_lea.hbm %s1967_s0, %s1232_s15  ;;  %s229_s7 = scalar_lea.vmem [#allocation3], %s1193_s16 }
  0x30   : > { %s236_s10 = sshll.u32 %s229_s7, 4  ;;  %p1725_p11 = pnand %p1336_p6, %p39_p8  ;;  %s1729_s10 = int_to_ptr.vmem [resolvable:$true] %s236_s10 }
  0x31   : > { %s1731_s30 = scalar_lea.sflag [#allocation4], %s225_s8  ;;  %s1466_s12 = scalar_lea.hbm %s1723_s19, 256 }
  0x32   : > { %p1467_p13 = scmp.ne.s32.totalorder %s1723_s19, %s1466_s12  ;;  %p1468_p0 = pneg %p1725_p11 }
  0x33   : > { %s1471_s17 = scalar_lea.hbm %s1967_s0, 512  ;;  %p1472_p7 = scmp.lt.u32.totalorder %s1723_s19, %s1967_s0 }
  0x34   : > { %p1469_p3 = pnand %p1468_p0, %p1467_p13  ;;  %p1473_p9 = scmp.lt.u32.totalorder %s1471_s17, %s1466_s12 }
  0x35   : > { %p1475_p2 = scmp.lt.u32.totalorder %s1466_s12, %s1723_s19 }
  0x36   : > { %p1470_p5 = pneg %p1469_p3  ;;  %p1474_p1 = por %p1473_p9, %p1472_p7 }
  0x38   : > { %p1476_p4 = por %p1475_p2, %p1474_p1 }
  0x3a   : > { %p1477_p6 = pnand %p1476_p4, %p1470_p5 }
  0x3c   : > { %1480 = shalt.err (!%p1477_p6)
}
  0x3d   : > { %s1481_s8 = scalar_lea.vmem %s1729_s10, 256  ;;  %s1571_s15 = smov [#allocation3]  }
  0x3e   : > { %p1482_p8 = scmp.ne.s32.totalorder %s1729_s10, %s1481_s8  ;;  %s1486_s16 = sshll.u32 %s1571_s15, 4  ;;  %s1487_s16 = int_to_ptr.vmem [resolvable:$false] %s1486_s16 }
  0x3f   : > { %s1488_s18 = scalar_lea.vmem %s1487_s16, 512  ;;  %p1489_p3 = scmp.lt.s32.totalorder %s1729_s10, %s1487_s16 }
  0x40   : > { %p1484_p10 = pnand %p1482_p8, %p1468_p0  ;;  %p1490_p7 = scmp.lt.s32.totalorder %s1488_s18, %s1481_s8 }
  0x42   : > { %p1485_p13 = pneg %p1484_p10  ;;  %p1491_p9 = por %p1490_p7, %p1489_p3 }
  0x44   : > { %p1492_p1 = pnand %p1491_p9, %p1485_p13 }
  0x46   : > { %1495 = shalt.err (!%p1492_p1)
}
  0x47   : > { %1330 = dma.hbm_to_vmem [thread:$0]  (!%p1725_p11), %s1723_s19, 256, %s1729_s10, %s1731_s30, %s1569_s20, %s1569_s20, %s1570_s26  }
  0x48   : > { %p1984_p0 = scmp.ne.s32.totalorder %s1979_s29, 0 }
  0x49   : > { %s1765_s12 = sand.u32 (!%p1984_p0), 1, %s1558_s22   ;;  %p1985_p5 = scmp.ne.s32.totalorder (!%p1984_p0), %s1977_s27, 0 }
  0x4a   : > { %255 = sbr.rel (%p1984_p0) target bundleno = 2423 (0x977), region = 44  ;;  %s1197_s17 = sshll.u32 (!%p1984_p0), %s1765_s12, 4 }
  0x4b   : > { %s258_s7 = scalar_lea.sflag (!%p1984_p0), [#allocation4], %s1765_s12  ;;  %s261_s11 = scalar_lea.vmem (!%p1984_p0), [#allocation3], %s1197_s17 }
  0x51   : > { %1541 = dma.done.wait (%p1985_p5), %s258_s7, 256  }
  0x52   : > { %1543 = vsyncadd (%p1985_p5), %s258_s7, 4294967040  ;;  %p1986_p11 = scmp.eq.s32.totalorder %s1641_s25, 0 }
  0x54   : > { %1545 = dma.done.wait (%p1986_p11), [#allocation7], 1024   ;;  %p1987_p2 = pmov %p1986_p11 }
  0x55   : > { %vm307_vm0 = vcmask 523264   ;;  %v1779_v0 = vld [vmem:[%s261_s11] sm:$0xff]  ;;  %v1781_v1 = vld [vmem:[%s261_s11 + $0x8] sm:$0xff]  ;;  %v1572_v22 = vmov 0   ;;  %p299_p4 = scmp.lt.s32.totalorder %s1641_s25, 1  ;;  %v361_v40 = vlaneseq  ;;  %v1573_v42 = vmov 0.0  }
  0x56   : > { %1547 = vsyncadd (%p1987_p2), [#allocation7], 4294966272  ;;  %v308_v2 = vsel %vm307_vm0, %v1779_v0, 0.0  ;;  %v311_v3 = vsel %vm307_vm0, %v1781_v1, 0.0  ;;  %v1386_v14 = vld [vmem:[#allocation6 + $0x4] ss:$8 sps:$4 sm:$0xff]   ;;  %446 = vmatprep.mubr.bf16.mxu0 %v1572_v22  ;;  %1255 = vmatprep.subr.bf16.mxu1 %v1573_v42 }
  0x57   : > { %309 = vadd.xlane.f32.xlu0 %v308_v2  ;;  %v1388_v15 = vld [vmem:[#allocation6] ss:$8 sps:$4 sm:$0xff]   ;;  %414 = vmatprep.subr.bf16.mxu0 %v1386_v14  ;;  %v1389_v16 = vld [vmem:[#allocation6 + $0x14] ss:$8 sps:$4 sm:$0xff]   ;;  %v1391_v17 = vld [vmem:[#allocation6 + $0x10] ss:$8 sps:$4 sm:$0xff]  }
  0x58   : > { %415 = vmatpush1.bf16.msra.mxu0 %v1388_v15  ;;  %v1392_v18 = vld [vmem:[#allocation6 + $0x24] ss:$8 sps:$4 sm:$0xff]   ;;  %v1394_v19 = vld [vmem:[#allocation6 + $0x20] ss:$8 sps:$4 sm:$0xff]   ;;  %v1395_v20 = vld [vmem:[#allocation6 + $0x34] ss:$8 sps:$4 sm:$0xff]  }
  0x59   : > { %416 = vmatprep.subr.bf16.mxu0 %v1389_v16  ;;  %v1397_v21 = vld [vmem:[#allocation6 + $0x30] ss:$8 sps:$4 sm:$0xff]   ;;  %s300_s27 = scalar_select %p299_p4, %s1641_s25, 1  ;;  %v362_v41 = vshrl.u32 %v361_v40, 7  ;;  %vm1574_vm1 = vmmov 0   ;;  %vm462_vm2 = vcmask 130048  }
  0x5a   : > { %v359_v44 = vld [vmem:[%s1970_s3] sm:$0x3]  ;;  %1257 = vmatprep.mubr.msk.bf16.mxu1 %vm1574_vm1, %v1573_v42  ;;  %s1575_s8 = smov 64   ;;  %s1576_s15 = smov 112   ;;  %vm713_vm3 = vcmask 261248   ;;  %vm847_vm4 = vcmask 392448  }
  0x5b   : > { %312 = vadd.xlane.f32.xlu0 %v311_v3  ;;  %s1200_s29 = sshll.u32 %s300_s27, 3  ;;  %v363_v43 = vsub.s32 0, %v362_v41  ;;  %v367_v45 = vsub.s32 1, %v362_v41  ;;  %s1577_s16 = smov 32   ;;  %vm981_vm5 = vcmask 523648  }
  0x5c   : > { %417 = vmatpush1.bf16.msra.mxu0 %v1391_v17  ;;  %s1796_s19 = scalar_lea.vmem %s1968_s1, %s1200_s29  ;;  %s1578_s18 = smov 96  }
  0x5d   : > { %418 = vmatprep.subr.bf16.mxu0 %v1392_v18  ;;  %v1201_v31 = vld [vmem:[%s1796_s19 + $0x1] ss:$0 sm:$0xff]  ;;  %v1202_v35 = vld [vmem:[%s1796_s19] ss:$0 sm:$0xff]  ;;  %v364_v46 = vrot.slane %v359_v44, %v363_v43  ;;  %v368_v48 = vrot.slane %v359_v44, %v367_v45  ;;  %s1579_s7 = smov 80   ;;  %s1580_s11 = smov 48  }
  0x5e   : > { %s1581_s27 = smov 16   ;;  %s1582_s10 = smov [#allocation8]  }
  0x5f   : > { %s1500_s30 = sshll.u32 %s1582_s10, 4  ;;  %s1501_s30 = int_to_ptr.vmem [resolvable:$false] %s1500_s30 }
  0x60   : > { %419 = vmatpush1.bf16.msra.mxu0 %v1394_v19 }
  0x61   : > { %420 = vmatprep.subr.bf16.mxu0 %v1395_v20 }
  0x64   : > { %421 = vmatpush1.bf16.msra.mxu0 %v1397_v21 }
  0x65   : > { %1279 = vmatprep.subr.bf16.mxu0 %v1573_v42 }
  0xe4   : > { %v310_v4 = vpop.xlane.xlu0 %309 }
  0xe5   : > { %v315_v5 = vmul.f32 0.015625, %v310_v4 }
  0xe7   : > { %v317_v6 = vsub.f32 %v1779_v0, %v315_v5 }
  0xe8   : > { %v313_v7 = vpop.xlane.xlu0 %312 }
  0xe9   : > { %v316_v8 = vmul.f32 0.015625, %v313_v7  ;;  %v319_v9 = vmul.f32 %v317_v6, %v317_v6 }
  0xeb   : > { %v318_v10 = vsub.f32 %v1781_v1, %v316_v8  ;;  %v321_v11 = vsel %vm307_vm0, %v319_v9, 0.0 }
  0xec   : > { %322 = vadd.xlane.f32.xlu1 %v321_v11 }
  0xed   : > { %v320_v12 = vmul.f32 %v318_v10, %v318_v10 }
  0xef   : > { %v324_v13 = vsel %vm307_vm0, %v320_v12, 0.0 }
  0xf0   : > { %325 = vadd.xlane.f32.xlu1 %v324_v13 }
 0x179   : > { %v323_v23 = vpop.xlane.xlu1 %322 }
 0x17a   : > { %v327_v24 = vmul.f32 0.015625, %v323_v23 }
 0x17c   : > { %v329_v25 = vadd.f32 1e-06, %v327_v24 }
 0x17d   : > { %v326_v26 = vpop.xlane.xlu1 %325 }
 0x17e   : > { %1402 = vrsqrt.f32 %v329_v25  ;;  %v328_v27 = vmul.f32 0.015625, %v326_v26 }
 0x180   : > { %v330_v28 = vadd.f32 1e-06, %v328_v27 }
 0x182   : > { %1404 = vrsqrt.f32 %v330_v28 }
 0x188   : > { %v1403_v29 = vpop.eup %1402 }
 0x189   : > { %v333_v30 = vmul.f32 %v1403_v29, %v317_v6 }
 0x18b   : > { %v342_v34 = vmul.f32 %v1201_v31, %v333_v30 }
 0x18c   : > { %v1405_v32 = vpop.eup %1404 }
 0x18d   : > { %v334_v33 = vmul.f32 %v1405_v32, %v318_v10  ;;  %v348_v37 = vadd.f32 %v1202_v35, %v342_v34 }
 0x18f   : > { %v343_v36 = vmul.f32 %v1201_v31, %v334_v33 }
 0x191   : > { %v349_v38 = vadd.f32 %v1202_v35, %v343_v36 }
 0x193   : > { %v350_v39 = vpack.c.bf16 %v349_v38, %v348_v37 }
 0x195   : > { %1211 = vmatmul.mubr.msk.bf16.vlgmr.msra.gmra.mrb[0].mxu0 %vm307_vm0, %v350_v39 }
 0x196   : > { %1281 = vmatprep.mubr.msk.bf16.mxu0 %vm1574_vm1, %v1573_v42 }
 0x268   : > { %v448_v47 = vpop.f32.mrb[0].mxu0 }
 0x269   : > { %v450_v49 = vpop.f32.mrb[1].mxu0  ;;  %v449_v51 = vadd.f32 %v448_v47, %v364_v46 }
 0x26a   : > { %v452_v50 = vpop.f32.mrb[2].mxu0  ;;  %v451_v54 = vadd.f32 %v450_v49, %v368_v48 }
 0x26b   : > { %v453_v52 = vadd.f32 %v452_v50, %v364_v46  ;;  %v454_v53 = vpop.f32.mrb[3].mxu0 }
 0x26c   : > { %v455_v55 = vadd.f32 %v454_v53, %v368_v48 }
 0x26d   : > { %v457_v56 = vpack.c.bf16 %v453_v52, %v449_v51 }
 0x26e   : > { %v1810_v57 = vpack.c.bf16 %v455_v55, %v451_v54 }
 0x26f   : > { %460 = vrot.lane.b32.xlu0 %v457_v56, %s1575_s8  ;;  %s1502_s8 = scalar_lea.vmem %s1501_s30, 512 }
 0x273   : > { %581 = vrot.lane.b32.xlu0 %v457_v56, %s1576_s15 }
 0x277   : > { %718 = vrot.lane.b32.xlu0 %v457_v56, %s1577_s16 }
 0x27b   : > { %716 = vrot.lane.b32.xlu0 %v457_v56, %s1578_s18 }
 0x27f   : > { %850 = vrot.lane.b32.xlu0 %v457_v56, %s1579_s7 }
 0x2e1   : > { %v461_v58 = vpop.permute.xlu0 %460 }
 0x2e2   : > { %v467_v59 = vsel %vm462_vm2, %v461_v58, 0 }
 0x2e3   : > { %1256 = vmatpush3.bf16.xpose.msra.mxu1 %v467_v59 }
 0x2e4   : > { %1261 = vmatprep.subr.bf16.mxu1 %v1573_v42 }
 0x2e5   : > { %v1818_v60 = vpop.permute.xlu0 %581 }
 0x2e9   : > { %v719_v61 = vpop.permute.xlu0 %718 }
 0x2ea   : > { %v724_v62 = vsel %vm462_vm2, %v719_v61, 0  ;;  %1258 = vmatmul.mubr.msk.bf16.vlgmr.msra.gmra.mrb[0].mxu1 %vm462_vm2, %v457_v56 }
 0x2eb   : > { %1262 = vmatpush3.bf16.msra.mxu1 %v1810_v57  ;;  %1280 = vmatpush3.bf16.xpose.msra.mxu0 %v724_v62 }
 0x2ec   : > { %1291 = vmatprep.subr.bf16.mxu0 %v1573_v42  ;;  %1263 = vmatprep.mubr.msk.bf16.mxu1 %vm1574_vm1, %v1573_v42 }
 0x2ed   : > { %1267 = vmatprep.subr.bf16.mxu1 %v1573_v42  ;;  %v717_v63 = vpop.permute.xlu0 %716 }
 0x2f1   : > { %v851_v34 = vpop.permute.xlu0 %850 }
 0x2f2   : > { %1282 = vmatmul.mubr.msk.bf16.vlgmr.msra.gmra.mrb[4].mxu0 %vm462_vm2, %v717_v63 }
 0x2f3   : > { %1293 = vmatprep.mubr.msk.bf16.mxu0 %vm1574_vm1, %v1573_v42 }
 0x3bd   : > { %v503_v2 = vpop.f32.mrb[0].mxu1 }
 0x3be   : > { %v510_v3 = vmul.f32 0.25, %v503_v2  ;;  %v1259_v4 = vpop.f32.mrb[1].mxu1 }
 0x3bf   : > { %v506_v5 = vpop.f32.mrb[2].mxu1 }
 0x3c0   : > { %v511_v6 = vmul.f32 0.25, %v506_v5  ;;  %v1260_v7 = vpop.f32.mrb[3].mxu1  ;;  %v512_v8 = vsel %vm462_vm2, %v510_v3, -inf }
 0x3c1   : > { %513 = vmax.xlane.f32.xlu1 %v512_v8 }
 0x3c2   : > { %v515_v9 = vsel %vm462_vm2, %v511_v6, -inf }
 0x3c5   : > { %516 = vmax.xlane.f32.xlu1 %v515_v9  ;;  %v1832_v10 = vpop.f32.mrb[4].mxu0 }
 0x3c6   : > { %v1283_v11 = vpop.f32.mrb[5].mxu0  ;;  %v767_v53 = vmul.f32 0.25, %v1832_v10 }
 0x3c7   : > { %v1834_v12 = vpop.f32.mrb[6].mxu0 }
 0x3c8   : > { %v1284_v13 = vpop.f32.mrb[7].mxu0  ;;  %v769_v58 = vsel %vm462_vm2, %v767_v53, -inf }
 0x44e   : > { %v514_v14 = vpop.xlane.xlu1 %513 }
 0x44f   : > { %v518_v15 = vsub.f32 %v510_v3, %v514_v14 }
 0x451   : > { %v520_v16 = vmul.f32 1.442695, %v518_v15 }
 0x452   : > { %v517_v17 = vpop.xlane.xlu1 %516 }
 0x453   : > { %1406 = vpow2.f32 %v520_v16  ;;  %v519_v18 = vsub.f32 %v511_v6, %v517_v17 }
 0x455   : > { %v522_v19 = vmul.f32 1.442695, %v519_v18 }
 0x457   : > { %1408 = vpow2.f32 %v522_v19 }
 0x45d   : > { %v1407_v20 = vpop.eup %1406 }
 0x45e   : > { %v524_v21 = vsel %vm462_vm2, %v1407_v20, 0.0 }
 0x45f   : > { %525 = vadd.xlane.f32.xlu1 %v524_v21 }
 0x461   : > { %v1409_v22 = vpop.eup %1408 }
 0x462   : > { %v527_v23 = vsel %vm462_vm2, %v1409_v22, 0.0 }
 0x463   : > { %528 = vadd.xlane.f32.xlu1 %v527_v23 }
 0x474   : > { %583 = vrot.lane.b32.xlu1 %v457_v56, %s1580_s11 }
 0x478   : > { %852 = vrot.lane.b32.xlu1 %v457_v56, %s1581_s27  ;;  %v768_v56 = vmul.f32 0.25, %v1834_v12 }
 0x4ec   : > { %v526_v24 = vpop.xlane.xlu1 %525 }
 0x4ed   : > { %1410 = vrcp.f32 %v526_v24 }
 0x4f0   : > { %v529_v25 = vpop.xlane.xlu1 %528 }
 0x4f1   : > { %1412 = vrcp.f32 %v529_v25 }
 0x4f4   : > { %v584_v26 = vpop.permute.xlu1 %583 }
 0x4f5   : > { %v589_v35 = vsel %vm462_vm2, %v584_v26, 0 }
 0x4f7   : > { %v1411_v28 = vpop.eup %1410 }
 0x4f8   : > { %v853_v27 = vpop.permute.xlu1 %852  ;;  %v531_v31 = vmul.f32 %v1411_v28, %v1407_v20 }
 0x4f9   : > { %v858_v29 = vsel %vm462_vm2, %v853_v27, 0 }
 0x4fa   : > { %1292 = vmatpush3.bf16.xpose.msra.mxu0 %v858_v29 }
 0x4fb   : > { %v1413_v30 = vpop.eup %1412  ;;  %1303 = vmatprep.subr.bf16.mxu0 %v1573_v42 }
 0x4fc   : > { %v533_v32 = vmul.f32 %v1413_v30, %v1409_v22 }
 0x4fe   : > { %v534_v33 = vpack.c.bf16 %v533_v32, %v531_v31 }
 0x500   : > { %1264 = vmatmul.mubr.msk.bf16.vlgmr.msra.gmra.mrb[4].mxu1 %vm462_vm2, %v534_v33 }
 0x501   : > { %1268 = vmatpush3.bf16.xpose.msra.mxu1 %v589_v35  ;;  %1294 = vmatmul.mubr.msk.bf16.vlgmr.msra.gmra.mrb[8].mxu0 %vm462_vm2, %v851_v34 }
 0x502   : > { %1269 = vmatprep.mubr.msk.bf16.mxu1 %vm1574_vm1, %v1573_v42  ;;  %1273 = vmatprep.subr.bf16.mxu1 %v1573_v42 }
 0x503   : > { %1311 = vmatprep.mubr.msk.bf16.mxu0 %vm1574_vm1, %v1573_v42 }
 0x508   : > { %1270 = vmatmul.mubr.msk.bf16.vlgmr.msra.gmra.mrb[8].mxu1 %vm462_vm2, %v1818_v60  ;;  %v772_v60 = vsel %vm462_vm2, %v768_v56, -inf }
 0x509   : > { %1275 = vmatprep.mubr.msk.bf16.mxu1 %vm1574_vm1, %v1573_v42 }
 0x5d3   : > { %v572_v36 = vpop.f32.mrb[4].mxu1 }
 0x5d4   : > { %579 = vst.msk [vmem:[#allocation2] sm:$0xff] %vm462_vm2, %v572_v36  ;;  %v1265_v37 = vpop.f32.mrb[5].mxu1  ;;  %v894_v38 = vpop.f32.mrb[8].mxu0 }
 0x5d5   : > { %v575_v39 = vpop.f32.mrb[6].mxu1  ;;  %v1295_v40 = vpop.f32.mrb[9].mxu0  ;;  %v901_v49 = vmul.f32 0.25, %v894_v38 }
 0x5d6   : > { %580 = vst.msk [vmem:[#allocation2 + $0x8] sm:$0xff] %vm462_vm2, %v575_v39  ;;  %v1266_v41 = vpop.f32.mrb[7].mxu1  ;;  %v897_v43 = vpop.f32.mrb[10].mxu0 }
 0x5d7   : > { %v1296_v44 = vpop.f32.mrb[11].mxu0  ;;  %v903_v55 = vsel %vm462_vm2, %v901_v49, -inf  ;;  %v902_v59 = vmul.f32 0.25, %v897_v43 }
 0x5d9   : > { %v906_v61 = vsel %vm462_vm2, %v902_v59, -inf }
 0x5db   : > { %v625_v45 = vpop.f32.mrb[8].mxu1 }
 0x5dc   : > { %v632_v46 = vmul.f32 0.25, %v625_v45  ;;  %v1271_v47 = vpop.f32.mrb[9].mxu1 }
 0x5dd   : > { %v628_v48 = vpop.f32.mrb[10].mxu1 }
 0x5de   : > { %v633_v50 = vmul.f32 0.25, %v628_v48  ;;  %v1272_v51 = vpop.f32.mrb[11].mxu1  ;;  %v634_v52 = vsel %vm462_vm2, %v632_v46, -inf }
 0x5df   : > { %635 = vmax.xlane.f32.xlu1 %v634_v52 }
 0x5e0   : > { %v637_v54 = vsel %vm462_vm2, %v633_v50, -inf }
 0x5e1   : > { %638 = vmax.xlane.f32.xlu0 %v637_v54  ;;  %v1398_v54 = vld [vmem:[%s1971_s4] sm:$0xff]  }
 0x5e2   : > { %1304 = vmatpush3.bf16.msra.mxu0 %v1398_v54 }
 0x5e3   : > { %904 = vmax.xlane.f32.xlu1 %v903_v55  ;;  %1305 = vmatprep.subr.bf16.mxu0 %v1573_v42 }
 0x5e5   : > { %770 = vmax.xlane.f32.xlu0 %v769_v58 }
 0x5e9   : > { %773 = vmax.xlane.f32.xlu0 %v772_v60  ;;  %v1399_v60 = vld [vmem:[%s1971_s4 + $0x8] sm:$0xff]  }
 0x5ea   : > { %1306 = vmatpush3.bf16.msra.mxu0 %v1399_v60 }
 0x5eb   : > { %1307 = vmatprep.subr.bf16.mxu0 %v1573_v42 }
 0x5ed   : > { %907 = vmax.xlane.f32.xlu0 %v906_v61  ;;  %v1400_v61 = vld [vmem:[%s1971_s4 + $0x10] sm:$0xff]  }
 0x5ee   : > { %1308 = vmatpush3.bf16.msra.mxu0 %v1400_v61 }
 0x5ef   : > { %1309 = vmatprep.subr.bf16.mxu0 %v1573_v42 }
 0x66c   : > { %v636_v62 = vpop.xlane.xlu1 %635 }
 0x66d   : > { %v640_v6 = vsub.f32 %v632_v46, %v636_v62 }
 0x66e   : > { %v639_v63 = vpop.xlane.xlu0 %638 }
 0x66f   : > { %v641_v7 = vsub.f32 %v633_v50, %v639_v63  ;;  %v642_v12 = vmul.f32 1.442695, %v640_v6 }
 0x670   : > { %v905_v2 = vpop.xlane.xlu1 %904 }
 0x671   : > { %v909_v3 = vsub.f32 %v901_v49, %v905_v2  ;;  %v644_v13 = vmul.f32 1.442695, %v641_v7 }
 0x672   : > { %v771_v4 = vpop.xlane.xlu0 %770 }
 0x673   : > { %v775_v5 = vsub.f32 %v767_v53, %v771_v4  ;;  %v911_v8 = vmul.f32 1.442695, %v909_v3  ;;  %v1401_v3 = vld [vmem:[%s1971_s4 + $0x18] sm:$0xff]  }
 0x674   : > { %1310 = vmatpush3.bf16.msra.mxu0 %v1401_v3 }
 0x675   : > { %v777_v9 = vmul.f32 1.442695, %v775_v5 }
 0x676   : > { %v774_v10 = vpop.xlane.xlu0 %773 }
 0x677   : > { %1414 = vpow2.f32 %v777_v9  ;;  %v776_v11 = vsub.f32 %v768_v56, %v774_v10 }
 0x678   : > { %1416 = vpow2.f32 %v911_v8 }
 0x679   : > { %v779_v14 = vmul.f32 1.442695, %v776_v11 }
 0x67a   : > { %v908_v15 = vpop.xlane.xlu0 %907 }
 0x67b   : > { %1418 = vpow2.f32 %v779_v14  ;;  %v910_v16 = vsub.f32 %v902_v59, %v908_v15 }
 0x67c   : > { %1420 = vpow2.f32 %v642_v12 }
 0x67d   : > { %1422 = vpow2.f32 %v644_v13  ;;  %v913_v17 = vmul.f32 1.442695, %v910_v16 }
 0x67f   : > { %1424 = vpow2.f32 %v913_v17  ;;  %v1220_v17 = vld [vmem:[%s1972_s5] ss:$0 sm:$0xff] }
 0x681   : > { %v1415_v18 = vpop.eup %1414 }
 0x682   : > { %v781_v19 = vsel %vm462_vm2, %v1415_v18, 0.0  ;;  %v1417_v20 = vpop.eup %1416 }
 0x683   : > { %782 = vadd.xlane.f32.xlu1 %v781_v19  ;;  %v915_v23 = vsel %vm462_vm2, %v1417_v20, 0.0 }
 0x685   : > { %v1419_v21 = vpop.eup %1418 }
 0x686   : > { %v1421_v22 = vpop.eup %1420  ;;  %v784_v24 = vsel %vm462_vm2, %v1419_v21, 0.0 }
 0x687   : > { %v1423_v25 = vpop.eup %1422  ;;  %916 = vadd.xlane.f32.xlu1 %v915_v23  ;;  %785 = vadd.xlane.f32.xlu0 %v784_v24  ;;  %v646_v26 = vsel %vm462_vm2, %v1421_v22, 0.0 }
 0x688   : > { %v649_v27 = vsel %vm462_vm2, %v1423_v25, 0.0 }
 0x689   : > { %v1425_v28 = vpop.eup %1424 }
 0x68a   : > { %v918_v29 = vsel %vm462_vm2, %v1425_v28, 0.0 }
 0x68b   : > { %647 = vadd.xlane.f32.xlu1 %v646_v26  ;;  %650 = vadd.xlane.f32.xlu0 %v649_v27 }
 0x68f   : > { %919 = vadd.xlane.f32.xlu0 %v918_v29 }
 0x69c   : > { %658 = vrot.lane.b32.xlu1 %v1810_v57, %s1576_s15 }
 0x6a0   : > { %926 = vrot.lane.b32.xlu1 %v1810_v57, %s1579_s7 }
 0x6a5   : > { %792 = vrot.lane.b32.xlu0 %v1810_v57, %s1578_s18 }
 0x710   : > { %v783_v30 = vpop.xlane.xlu1 %782 }
 0x714   : > { %v917_v31 = vpop.xlane.xlu1 %916  ;;  %v786_v32 = vpop.xlane.xlu0 %785 }
 0x718   : > { %v648_v33 = vpop.xlane.xlu1 %647  ;;  %v651_v34 = vpop.xlane.xlu0 %650 }
 0x719   : > { %1426 = vrcp.f32 %v648_v33 }
 0x71a   : > { %1428 = vrcp.f32 %v651_v34 }
 0x71b   : > { %1430 = vrcp.f32 %v786_v32 }
 0x71c   : > { %v659_v35 = vpop.permute.xlu1 %658  ;;  %1432 = vrcp.f32 %v783_v30  ;;  %v920_v37 = vpop.xlane.xlu0 %919 }
 0x71d   : > { %1274 = vmatpush3.bf16.msra.mxu1 %v659_v35  ;;  %1434 = vrcp.f32 %v920_v37 }
 0x71e   : > { %1285 = vmatprep.subr.bf16.mxu1 %v1573_v42  ;;  %1436 = vrcp.f32 %v917_v31 }
 0x720   : > { %v793_v43 = vpop.permute.xlu0 %792  ;;  %v927_v49 = vpop.permute.xlu1 %926 }
 0x723   : > { %v1427_v36 = vpop.eup %1426 }
 0x724   : > { %v1429_v38 = vpop.eup %1428  ;;  %v653_v39 = vmul.f32 %v1427_v36, %v1421_v22 }
 0x725   : > { %v655_v40 = vmul.f32 %v1429_v38, %v1423_v25  ;;  %v1431_v41 = vpop.eup %1430 }
 0x726   : > { %v1433_v44 = vpop.eup %1432  ;;  %v790_v45 = vmul.f32 %v1431_v41, %v1419_v21 }
 0x727   : > { %v656_v57 = vpack.c.bf16 %v655_v40, %v653_v39  ;;  %v788_v46 = vmul.f32 %v1433_v44, %v1415_v18  ;;  %v1435_v48 = vpop.eup %1434  ;;  %v1226_v18 = vld [vmem:[%s1796_s19 + $0x2] ss:$0 sm:$0xff] }
 0x728   : > { %v1437_v50 = vpop.eup %1436  ;;  %v924_v51 = vmul.f32 %v1435_v48, %v1425_v28 }
 0x729   : > { %1276 = vmatmul.mubr.msk.bf16.vlgmr.msra.gmra.mrb[12].mxu1 %vm462_vm2, %v656_v57  ;;  %v791_v47 = vpack.c.bf16 %v790_v45, %v788_v46  ;;  %v922_v52 = vmul.f32 %v1437_v50, %v1417_v20 }
 0x72a   : > { %1286 = vmatpush3.bf16.msra.mxu1 %v793_v43  ;;  %1287 = vmatprep.mubr.msk.bf16.mxu1 %vm1574_vm1, %v1573_v42 }
 0x72b   : > { %1297 = vmatprep.subr.bf16.mxu1 %v1573_v42  ;;  %v925_v53 = vpack.c.bf16 %v924_v51, %v922_v52 }
 0x731   : > { %1288 = vmatmul.mubr.msk.bf16.vlgmr.msra.gmra.mrb[16].mxu1 %vm462_vm2, %v791_v47 }
 0x732   : > { %1298 = vmatpush3.bf16.msra.mxu1 %v927_v49  ;;  %1299 = vmatprep.mubr.msk.bf16.mxu1 %vm1574_vm1, %v1573_v42 }
 0x739   : > { %1300 = vmatmul.mubr.msk.bf16.vlgmr.msra.gmra.mrb[20].mxu1 %vm462_vm2, %v925_v53 }
 0x7fc   : > { %v698_v55 = vpop.f32.mrb[12].mxu1 }
 0x7fd   : > { %707 = vrot.lane.b32.xlu1 %v698_v55, %s1581_s27  ;;  %v1277_v56 = vpop.f32.mrb[13].mxu1 }
 0x7fe   : > { %v701_v58 = vpop.f32.mrb[14].mxu1 }
 0x7ff   : > { %v1278_v59 = vpop.f32.mrb[15].mxu1 }
 0x801   : > { %709 = vrot.lane.b32.xlu1 %v701_v58, %s1581_s27  ;;  %s297_s27 = scalar_lea.vmem [#allocation8], %s1197_s17 }
 0x802   : > { %s1094_s29 = sshll.u32 %s297_s27, 4  ;;  %s1920_s29 = int_to_ptr.vmem [resolvable:$true] %s1094_s29 }
 0x803   : > { %s1496_s17 = scalar_lea.vmem %s1920_s29, 256  ;;  %p1503_p13 = scmp.lt.s32.totalorder %s1920_s29, %s1501_s30 }
 0x804   : > { %v832_v62 = vpop.f32.mrb[16].mxu1  ;;  %p1497_p6 = scmp.ne.s32.totalorder %s1920_s29, %s1496_s17  ;;  %p1504_p3 = scmp.lt.s32.totalorder %s1502_s8, %s1496_s17 }
 0x805   : > { %841 = vrot.lane.b32.xlu0 %v832_v62, %s1577_s16  ;;  %v1289_v63 = vpop.f32.mrb[17].mxu1 }
 0x806   : > { %v835_v2 = vpop.f32.mrb[18].mxu1  ;;  %p1498_p8 = pnand %p1497_p6, %p1714_p12  ;;  %p1505_p7 = por %p1504_p3, %p1503_p13 }
 0x807   : > { %843 = vrot.lane.b32.xlu1 %v835_v2, %s1577_s16  ;;  %v1290_v4 = vpop.f32.mrb[19].mxu1 }
 0x808   : > { %p1499_p10 = pneg %p1498_p8 }
 0x80a   : > { %p1506_p9 = pnand %p1505_p7, %p1499_p10 }
 0x80c   : > { %v966_v5 = vpop.f32.mrb[20].mxu1 }
 0x80d   : > { %975 = vrot.lane.b32.xlu0 %v966_v5, %s1580_s11  ;;  %v1301_v6 = vpop.f32.mrb[21].mxu1 }
 0x80e   : > { %v969_v7 = vpop.f32.mrb[22].mxu1 }
 0x80f   : > { %977 = vrot.lane.b32.xlu1 %v969_v7, %s1580_s11  ;;  %v1302_v8 = vpop.f32.mrb[23].mxu1  ;;  %s1233_s11 = sshll.u32 %s1641_s25, 8  ;;  %s1081_s25 = scalar_lea.sflag [#allocation5], %s1765_s12 }
 0x810   : > { %s1918_s19 = scalar_lea.hbm %s1973_s6, %s1233_s11 }
 0x86f   : > { %v708_v9 = vpop.permute.xlu1 %707 }
 0x870   : > { %714 = vst.msk [vmem:[#allocation2] sm:$0xff] %vm713_vm3, %v708_v9 }
 0x873   : > { %v710_v10 = vpop.permute.xlu1 %709 }
 0x874   : > { %715 = vst.msk [vmem:[#allocation2 + $0x8] sm:$0xff] %vm713_vm3, %v710_v10 }
 0x877   : > { %v842_v11 = vpop.permute.xlu0 %841 }
 0x878   : > { %848 = vst.msk [vmem:[#allocation2] sm:$0xff] %vm847_vm4, %v842_v11 }
 0x879   : > { %v844_v12 = vpop.permute.xlu1 %843 }
 0x87a   : > { %849 = vst.msk [vmem:[#allocation2 + $0x8] sm:$0xff] %vm847_vm4, %v844_v12 }
 0x87f   : > { %v976_v42 = vpop.permute.xlu0 %975 }
 0x880   : > { %982 = vst.msk [vmem:[#allocation2] sm:$0xff] %vm981_vm5, %v976_v42 }
 0x881   : > { %v978_v13 = vpop.permute.xlu1 %977 }
 0x882   : > { %983 = vst.msk [vmem:[#allocation2 + $0x8] sm:$0xff] %vm981_vm5, %v978_v13 }
 0x887   : > { %v984_v14 = vld [vmem:[#allocation2] sm:$0xff] }
 0x889   : > { %v985_v15 = vld [vmem:[#allocation2 + $0x8] sm:$0xff] }
 0x88a   : > { %v986_v16 = vpack.c.bf16 %v985_v15, %v984_v14 }
 0x88c   : > { %1312 = vmatmul.mubr.msk.bf16.vlgmr.msra.gmra.mrb[12].mxu0 %vm307_vm0, %v986_v16 }
 0x95f   : > { %v1063_v19 = vpop.f32.mrb[12].mxu0 }
 0x960   : > { %v1064_v20 = vadd.f32 %v1220_v17, %v1063_v19  ;;  %v1313_v21 = vpop.f32.mrb[13].mxu0 }
 0x961   : > { %v1066_v22 = vpop.f32.mrb[14].mxu0 }
 0x962   : > { %v1074_v23 = vmul.f32 %v1226_v18, %v1064_v20  ;;  %v1067_v24 = vadd.f32 %v1220_v17, %v1066_v22  ;;  %v1314_v25 = vpop.f32.mrb[15].mxu0 }
 0x964   : > { %v1076_v26 = vadd.f32 %v1074_v23, %v1779_v0  ;;  %v1075_v27 = vmul.f32 %v1226_v18, %v1067_v24 }
 0x966   : > { %1078 = vst.msk [vmem:[%s297_s27] sm:$0xff] %vm307_vm0, %v1076_v26  ;;  %v1077_v28 = vadd.f32 %v1075_v27, %v1781_v1 }
 0x968   : > { %1079 = vst.msk [vmem:[%s297_s27 + $0x8] sm:$0xff] %vm307_vm0, %v1077_v28 }
 0x969   : > { %1509 = shalt.err (!%p1506_p9)
}
 0x96a   : > { %s1510_s15 = scalar_lea.hbm %s1918_s19, 256  ;;  %s1514_s7 = scalar_lea.hbm %s1973_s6, 512 }
 0x96b   : > { %p1511_p1 = scmp.ne.s32.totalorder %s1918_s19, %s1510_s15  ;;  %p1515_p11 = scmp.lt.u32.totalorder %s1918_s19, %s1973_s6 }
 0x96c   : > { %p1516_p2 = scmp.lt.u32.totalorder %s1514_s7, %s1510_s15  ;;  %p1518_p6 = scmp.lt.u32.totalorder %s1510_s15, %s1918_s19 }
 0x96d   : > { %p1512_p0 = pnand %p1511_p1, %p1714_p12 }
 0x96e   : > { %p1517_p4 = por %p1516_p2, %p1515_p11 }
 0x96f   : > { %p1513_p5 = pneg %p1512_p0 }
 0x970   : > { %p1519_p8 = por %p1518_p6, %p1517_p4 }
 0x972   : > { %p1520_p10 = pnand %p1519_p8, %p1513_p5 }
 0x974   : > { %1523 = shalt.err (!%p1520_p10)
}
 0x975   : > { %s1583_s20 = smov 128   ;;  %s1584_s26 = smov 8  }
 0x976   : > { %1321 = dma.vmem_to_hbm [thread:$0]  (%p1714_p12), %s1920_s29, 256, %s1918_s19, %s1081_s25, %s1583_s20, %s1583_s20, %s1584_s26  }
 0x977 PF: > { %s1109_s17 = sand.u32 1, %s1554_s21   ;;  %p1988_p13 = scmp.ne.s32.totalorder %s1978_s28, 0 }
 0x978   : > { %p1989_p3 = scmp.ge.s32.totalorder %s1566_s24, 2  ;;  %s1110_s10 = scalar_lea.sflag [#allocation5], %s1109_s17 }
 0x97a   : > { %p1332_p7 = pnand %p1989_p3, %p1988_p13 }
 0x97c   : > { %1549 = dma.done.wait (!%p1332_p7), %s1110_s10, 256  }
 0x97d   : > { %1551 = vsyncadd (!%p1332_p7), %s1110_s10, 4294967040  ;;  %p20_p9 = scmp.ge.s32.totalorder %s1676_s9, 4   ;;  %s1990_s21 = smov %s1558_s22 }
 0x97e   : > { %s1991_s22 = smov %s1562_s23  ;;  %s1992_s23 = smov %s1710_s13 }
 0x97f   : > { %s1993_s24 = smov %s1676_s9  ;;  %22 = sbr.rel (!%p20_p9) target bundleno = 6 (0x6), region = 96 }
 0x986   :  { %1115 = vsyncpa [#allocation4], 1 }
 0x987   :  { %1117 = vsyncpa [#allocation4 + $0x1], 1 }
 0x988   :  { %1118 = vsyncpa [#allocation7], 1 }
 0x989   :  { %1119 = vsyncpa [#allocation5], 1 }
 0x98a   :  { %1121 = vsyncpa [#allocation5 + $0x1], 1 }

</bundles_post_ra>
